<compile_context>
chip_gen: v7x
topology: tpu7x:2x2x1
jax: 0.10.0
libtpu: 0.0.40
codegen_flags: <defaults>
</compile_context>

<pallas_src>
import functools

import jax
import jax.numpy as jnp
from jax.experimental import pallas as pl
from jax.experimental.pallas import tpu as pltpu


LANE = 128              # TPU lane width (last-dim granularity)
MAX_TILE_B = 131072     # batch-tile cap: safe on all generations (v5e/v6e/v7x)
MIN_GRID_STEPS = 8      # keep >= 8 tiles for large B so v7x's 2 TCs both stream


def _round_up(n, m):
    return ((n + m - 1) // m) * m


def _sigmoid(z):
    # Single EUP push (tanh); the mul/add land on under-utilized VALU slots.
    return 0.5 * jnp.tanh(0.5 * z) + 0.5


def _ff_kernel(x_ref, p1_ref, p2_ref, p3_ref, o_ref):
    # Batch-on-lanes: x_ref is (10, TB); per-layer params are [W | b] with
    # W in PyTorch-native (out, in) layout and b as the last column.
    x = x_ref[...]                                                      # (10, TB)
    p1 = p1_ref[...]                                                    # (5, 11)
    p2 = p2_ref[...]                                                    # (2, 6)
    p3 = p3_ref[...]                                                    # (1, 3)

    h1 = _sigmoid(jnp.dot(p1[:, :10], x,
                          preferred_element_type=jnp.float32) + p1[:, 10:])   # (5, TB)
    h2 = _sigmoid(jnp.dot(p2[:, :5], h1,
                          preferred_element_type=jnp.float32) + p2[:, 5:])    # (2, TB)
    h3 = _sigmoid(jnp.dot(p3[:, :2], h2,
                          preferred_element_type=jnp.float32) + p3[:, 2:])    # (1, TB)

    o_ref[...] = h3.astype(o_ref.dtype)                                 # lane-dense store


def _pack_params(params):
    """Pack PyTorch-native (w:(out,in), b:(out,)) into per-layer [W | b] arrays."""
    def pack(w, b):
        return jnp.concatenate(
            [w.astype(jnp.float32), b.reshape(-1, 1).astype(jnp.float32)], axis=1)
    return (pack(params["w1"], params["b1"]),
            pack(params["w2"], params["b2"]),
            pack(params["w3"], params["b3"]))


def _forward_lanes(x_t, params, tile_b):
    """Core: x_t is feature-major (10, B) float32; returns (1, B) float32."""
    F, B = x_t.shape
    assert F == 10, f"expected 10 input features, got {F}"
    p1, p2, p3 = _pack_params(params)
    x_t = x_t.astype(jnp.float32)

    # Pad batch only to the lane width (not to tile_b) -> negligible waste.
    padded_b = _round_up(B, LANE)
    if padded_b != B:
        x_t = jnp.pad(x_t, ((0, 0), (0, padded_b - B)))

    if tile_b is None:
        # Aim for >= MIN_GRID_STEPS tiles (keeps both v7x TCs busy for big B),
        # capped by MAX_TILE_B, never below one lane-tile.
        target = _round_up(-(-padded_b // MIN_GRID_STEPS), LANE)
        tile_b = max(LANE, min(MAX_TILE_B, target))
    else:
        tile_b = max(LANE, _round_up(int(tile_b), LANE))   # enforce 128 multiple
    tile_b = min(tile_b, padded_b)

    grid = (pl.cdiv(padded_b, tile_b),)

    # x / out tiles walk the batch axis; tiny packed params stay VMEM-resident.
    def batch_spec(rows):
        return pl.BlockSpec((rows, tile_b), lambda i: (0, i))

    def resident(arr):
        return pl.BlockSpec(arr.shape, lambda i: (0, 0))

    cost = pl.CostEstimate(
        flops=2 * padded_b * (10 * 5 + 5 * 2 + 2 * 1),
        transcendentals=padded_b * (5 + 2 + 1),       # one tanh per sigmoid element
        bytes_accessed=padded_b * (10 + 1) * 4 + 4 * (p1.size + p2.size + p3.size),
    )

    out_t = pl.pallas_call(
        _ff_kernel,
        out_shape=jax.ShapeDtypeStruct((1, padded_b), jnp.float32),
        grid=grid,
        in_specs=[
            batch_spec(10),
            resident(p1), resident(p2), resident(p3),
        ],
        out_specs=batch_spec(1),
        compiler_params=pltpu.CompilerParams(
            dimension_semantics=("parallel",),        # shard batch tiles across TCs
            vmem_limit_bytes=40 * 1024 * 1024,        # fits v7x's 64 MiB with headroom
        ),
        cost_estimate=cost,
    )(x_t, p1, p2, p3)

    return out_t[:, :B]


@functools.partial(jax.jit, static_argnames=("tile_b",))
def feedforward_t(x_t, params, *, tile_b=None):
    """Preferred entry point: feature-major x (10, B) -> (1, B). No transpose copy."""
    return _forward_lanes(x_t, params, tile_b)


@functools.partial(jax.jit, static_argnames=("tile_b",))
def feedforward(x, params, *, tile_b=None):
    """PyTorch-style x (B, 10) -> (B, 1). Jitted so the transpose + lane padding
    fuse into a single copy feeding the kernel; output transpose is a free reshape."""
    return _forward_lanes(x.T, params, tile_b).T


def init_params(key):
    """PyTorch nn.Linear default init: U(-1/sqrt(fan_in), 1/sqrt(fan_in)).
    Weights PyTorch-native (out_features, in_features); biases (out_features,)."""
    dims = [(10, 5), (5, 2), (2, 1)]
    params = {}
    for idx, (fan_in, fan_out) in enumerate(dims, start=1):
        key, kw, kb = jax.random.split(key, 3)
        bound = 1.0 / jnp.sqrt(jnp.float32(fan_in))
        params[f"w{idx}"] = jax.random.uniform(
            kw, (fan_out, fan_in), jnp.float32, -bound, bound)
        params[f"b{idx}"] = jax.random.uniform(
            kb, (fan_out,), jnp.float32, -bound, bound)
    return params


def feedforward_ref(x, params):
    h = jax.nn.sigmoid(x @ params["w1"].T + params["b1"])
    h = jax.nn.sigmoid(h @ params["w2"].T + params["b2"])
    return jax.nn.sigmoid(h @ params["w3"].T + params["b3"])


if __name__ == "__main__":
    key = jax.random.PRNGKey(0)
    key, kx = jax.random.split(key)
    batch = 8
    x = jax.random.normal(kx, (batch, 10), jnp.float32)

    params = init_params(key)

    out = feedforward(x, params)
    out = jax.block_until_ready(out)

    ref = feedforward_ref(x, params)
    assert out.shape == (batch, 1), out.shape
    # Exact (tanh-form) sigmoid: tight tolerance vs the pure-JAX reference.
    assert jnp.allclose(out, ref, atol=1e-4, rtol=0.0), "mismatch vs reference"

    print("KERNEL_OK")
</pallas_src>

<mosaic_0001>
module attributes {stable_mosaic.version = 11 : i64} {
  func.func @_ff_kernel(%arg0: i32, %arg1: memref<10x128xf32, #tpu.memory_space<vmem>>, %arg2: memref<5x11xf32, #tpu.memory_space<vmem>>, %arg3: memref<2x6xf32, #tpu.memory_space<vmem>>, %arg4: memref<1x3xf32, #tpu.memory_space<vmem>>, %arg5: memref<1x128xf32, #tpu.memory_space<vmem>>) attributes {dimension_semantics = [#tpu.dimension_semantics<parallel>], iteration_bounds = array<i64: 1>, scalar_prefetch = 0 : i64, scratch_operands = 0 : i64, tpu.core_type = #tpu.core_type<tc>, window_params = [{transform_indices = @transform_0, window_bounds = array<i64: 10, 128>}, {pipeline_mode = #tpu.pipeline_mode<synchronous>, transform_indices = @transform_1, window_bounds = array<i64: 5, 11>}, {pipeline_mode = #tpu.pipeline_mode<synchronous>, transform_indices = @transform_2, window_bounds = array<i64: 2, 6>}, {pipeline_mode = #tpu.pipeline_mode<synchronous>, transform_indices = @transform_3, window_bounds = array<i64: 1, 3>}, {transform_indices = @transform_4, window_bounds = array<i64: 1, 128>}]} {
    %c0 = arith.constant 0 : index
    %c0_0 = arith.constant 0 : index
    %0 = vector.load %arg1[%c0, %c0_0] : memref<10x128xf32, #tpu.memory_space<vmem>>, vector<10x128xf32>
    %c0_1 = arith.constant 0 : index
    %c0_2 = arith.constant 0 : index
    %1 = vector.load %arg2[%c0_1, %c0_2] : memref<5x11xf32, #tpu.memory_space<vmem>>, vector<5x11xf32>
    %c0_3 = arith.constant 0 : index
    %c0_4 = arith.constant 0 : index
    %2 = vector.load %arg3[%c0_3, %c0_4] : memref<2x6xf32, #tpu.memory_space<vmem>>, vector<2x6xf32>
    %c0_5 = arith.constant 0 : index
    %c0_6 = arith.constant 0 : index
    %3 = vector.load %arg4[%c0_5, %c0_6] : memref<1x3xf32, #tpu.memory_space<vmem>>, vector<1x3xf32>
    %4 = vector.extract_strided_slice %1 {offsets = [0, 0], sizes = [5, 10], strides = [1, 1]} : vector<5x11xf32> to vector<5x10xf32>
    %cst = arith.constant dense<0.000000e+00> : vector<5x128xf32>
    %5 = tpu.matmul %4, %0, %cst {dimension_numbers = #tpu.dot_dimension_numbers<[1], [0], [0], [1], [0, 0, 1, 1], [], []>} : vector<5x10xf32>, vector<10x128xf32>, vector<5x128xf32> -> vector<5x128xf32>
    %6 = vector.extract_strided_slice %1 {offsets = [0, 10], sizes = [5, 1], strides = [1, 1]} : vector<5x11xf32> to vector<5x1xf32>
    %7 = vector.broadcast %6 : vector<5x1xf32> to vector<5x128xf32>
    %8 = arith.addf %5, %7 : vector<5x128xf32>
    %cst_7 = arith.constant 5.000000e-01 : f32
    %9 = vector.broadcast %cst_7 : f32 to vector<5x128xf32>
    %10 = arith.mulf %9, %8 : vector<5x128xf32>
    %11 = math.tanh %10 : vector<5x128xf32>
    %cst_8 = arith.constant 5.000000e-01 : f32
    %12 = vector.broadcast %cst_8 : f32 to vector<5x128xf32>
    %13 = arith.mulf %12, %11 : vector<5x128xf32>
    %cst_9 = arith.constant 5.000000e-01 : f32
    %14 = vector.broadcast %cst_9 : f32 to vector<5x128xf32>
    %15 = arith.addf %13, %14 : vector<5x128xf32>
    %16 = vector.extract_strided_slice %2 {offsets = [0, 0], sizes = [2, 5], strides = [1, 1]} : vector<2x6xf32> to vector<2x5xf32>
    %cst_10 = arith.constant dense<0.000000e+00> : vector<2x128xf32>
    %17 = tpu.matmul %16, %15, %cst_10 {dimension_numbers = #tpu.dot_dimension_numbers<[1], [0], [0], [1], [0, 0, 1, 1], [], []>} : vector<2x5xf32>, vector<5x128xf32>, vector<2x128xf32> -> vector<2x128xf32>
    %18 = vector.extract_strided_slice %2 {offsets = [0, 5], sizes = [2, 1], strides = [1, 1]} : vector<2x6xf32> to vector<2x1xf32>
    %19 = vector.broadcast %18 : vector<2x1xf32> to vector<2x128xf32>
    %20 = arith.addf %17, %19 : vector<2x128xf32>
    %cst_11 = arith.constant 5.000000e-01 : f32
    %21 = vector.broadcast %cst_11 : f32 to vector<2x128xf32>
    %22 = arith.mulf %21, %20 : vector<2x128xf32>
    %23 = math.tanh %22 : vector<2x128xf32>
    %cst_12 = arith.constant 5.000000e-01 : f32
    %24 = vector.broadcast %cst_12 : f32 to vector<2x128xf32>
    %25 = arith.mulf %24, %23 : vector<2x128xf32>
    %cst_13 = arith.constant 5.000000e-01 : f32
    %26 = vector.broadcast %cst_13 : f32 to vector<2x128xf32>
    %27 = arith.addf %25, %26 : vector<2x128xf32>
    %28 = vector.extract_strided_slice %3 {offsets = [0, 0], sizes = [1, 2], strides = [1, 1]} : vector<1x3xf32> to vector<1x2xf32>
    %cst_14 = arith.constant dense<0.000000e+00> : vector<1x128xf32>
    %29 = tpu.matmul %28, %27, %cst_14 {dimension_numbers = #tpu.dot_dimension_numbers<[1], [0], [0], [1], [0, 0, 1, 1], [], []>} : vector<1x2xf32>, vector<2x128xf32>, vector<1x128xf32> -> vector<1x128xf32>
    %30 = vector.extract_strided_slice %3 {offsets = [0, 2], sizes = [1, 1], strides = [1, 1]} : vector<1x3xf32> to vector<1x1xf32>
    %31 = vector.broadcast %30 : vector<1x1xf32> to vector<1x128xf32>
    %32 = arith.addf %29, %31 : vector<1x128xf32>
    %cst_15 = arith.constant 5.000000e-01 : f32
    %33 = vector.broadcast %cst_15 : f32 to vector<1x128xf32>
    %34 = arith.mulf %33, %32 : vector<1x128xf32>
    %35 = math.tanh %34 : vector<1x128xf32>
    %cst_16 = arith.constant 5.000000e-01 : f32
    %36 = vector.broadcast %cst_16 : f32 to vector<1x128xf32>
    %37 = arith.mulf %36, %35 : vector<1x128xf32>
    %cst_17 = arith.constant 5.000000e-01 : f32
    %38 = vector.broadcast %cst_17 : f32 to vector<1x128xf32>
    %39 = arith.addf %37, %38 : vector<1x128xf32>
    %c0_18 = arith.constant 0 : index
    %c0_19 = arith.constant 0 : index
    %40 = vector.load %arg5[%c0_18, %c0_19] : memref<1x128xf32, #tpu.memory_space<vmem>>, vector<1x128xf32>
    tpu.vector_store %arg5[%c0_18, %c0_19], %39 {strides = array<i32>} : memref<1x128xf32, #tpu.memory_space<vmem>>, vector<1x128xf32>,
    return
  }
  func.func @transform_0(%arg0: i32) -> (i32, i32) {
    %c0_i32 = arith.constant 0 : i32
    %c0_i32_0 = arith.constant 0 : i32
    return %c0_i32, %arg0 : i32, i32
  }
  func.func @transform_1(%arg0: i32) -> (i32, i32) {
    %c0_i32 = arith.constant 0 : i32
    %c0_i32_0 = arith.constant 0 : i32
    %c0_i32_1 = arith.constant 0 : i32
    return %c0_i32, %c0_i32_0 : i32, i32
  }
  func.func @transform_2(%arg0: i32) -> (i32, i32) {
    %c0_i32 = arith.constant 0 : i32
    %c0_i32_0 = arith.constant 0 : i32
    %c0_i32_1 = arith.constant 0 : i32
    return %c0_i32, %c0_i32_0 : i32, i32
  }
  func.func @transform_3(%arg0: i32) -> (i32, i32) {
    %c0_i32 = arith.constant 0 : i32
    %c0_i32_0 = arith.constant 0 : i32
    %c0_i32_1 = arith.constant 0 : i32
    return %c0_i32, %c0_i32_0 : i32, i32
  }
  func.func @transform_4(%arg0: i32) -> (i32, i32) {
    %c0_i32 = arith.constant 0 : i32
    %c0_i32_0 = arith.constant 0 : i32
    return %c0_i32, %arg0 : i32, i32
  }
}

</mosaic_0001>

<bundles_post_ra>
// kernel: feedforward.1
= control target key start
LH: loop header
LB: loop body
LE: loop exit
PB: predicated region body
PF: predicated region fallthrough
CT: control target
= control target key end

     0   :  { %vm30_vm0 = vcmask 1041408   ;;  %v339_v0 = vmov 0.0|0.0   ;;  %vm340_vm1 = vmmov 1   ;;  %vm341_vm3 = vmmov 0   ;;  %s394_s0 = inlined_call_operand.vmem [shape: f32[10,128], index: 0, kind: input, shape index: {}]   ;;  %s395_s1 = inlined_call_operand.vmem [shape: f32[5,11], index: 1, kind: input, shape index: {}]   ;;  %s396_s2 = inlined_call_operand.vmem [shape: f32[2,6], index: 2, kind: input, shape index: {}]   ;;  %s397_s3 = inlined_call_operand.vmem [shape: f32[1,3], index: 3, kind: input, shape index: {}]   ;;  %s398_s4 = inlined_call_operand.vmem [shape: f32[1,128], index: 4, kind: output, shape index: {}]  }
   0x1   :  { %318 = vmatprep.subr.bf16.mxu0 %v339_v0  ;;  %v17_v1 = vld [vmem:[%s394_s0] sm:$0xff]  ;;  %v18_v2 = vld [vmem:[%s394_s0 + $0x8] sm:$0x3]  ;;  %vm320_vm2 = vmpackc.low %vm30_vm0, %vm340_vm1  ;;  %v342_v4 = vmov 0.0   ;;  %v343_v6 = vmov 10   ;;  %vm27_vm4 = vcmask 80896   ;;  %v199_v27 = vlaneseq }
   0x2   :  { %v319_v3 = vpack.c.bf16 %v18_v2, %v17_v1  ;;  %305 = vmatprep.mubr.msk.f32.mxu0 %vm341_vm3, %v342_v4  ;;  %v19_v5 = vld [vmem:[%s395_s1] sm:$0x1f]  ;;  %329 = vset.pattern.permute.xlu0 %v343_v6  ;;  %v344_v8 = vmov 5   ;;  %vm116_vm5 = vcmask 1044480   ;;  %vm113_vm6 = vcmask 39936  }
   0x3   :  { %24 = vperm.xlu0 %329, %v19_v5   ;;  %308 = vmatprep.subr.mxu1 %v342_v4  ;;  %v20_v7 = vld [vmem:[%s396_s2] sm:$0x3]  ;;  %v345_v18 = vmov 2   ;;  %vm203_vm7 = vcmask 15360   ;;  %v200_v28 = vshrl.u32 %v199_v27, 7 }
   0x4   :  { %321 = vmatpush3.bf16.msk.msra.mxu0 %vm320_vm2, %v319_v3  ;;  %310 = vmatprep.mubr.msk.f32.mxu1 %vm341_vm3, %v342_v4  ;;  %v21_v17 = vld [vmem:[%s397_s3] sm:$0x1] }
   0x5   :  { %331 = vset.pattern.permute.xlu1 %v345_v18  ;;  %v201_v29 = vsub.s32 0, %v200_v28 }
   0x6   :  { %196 = vperm.xlu1 %331, %v21_v17  }
   0x7   :  { %306 = vmatmul.mubr.msk.f32.vlgmr.msra.gmra.mrb[0].mxu0 %vm27_vm4, %v19_v5  ;;  %330 = vset.pattern.permute.xlu0 %v344_v8 }
   0x8   :  { %110 = vperm.xlu0 %330, %v20_v7  }
   0xc   :  { %332 = vset.pattern.permute.xlu0 %v345_v18 }
  0x82   :  { %v25_v9 = vpop.permute.xlu0 %24 }
  0x85   :  { %v197_v30 = vpop.permute.xlu1 %196 }
  0x86   :  { %v202_v31 = vrot.slane %v197_v30, %v201_v29 }
  0x87   :  { %v111_v19 = vpop.permute.xlu0 %110 }
  0xda   :  { %v100_v10 = vpop.f32.mrb[0].mxu0 }
  0xdb   :  { %v101_v11 = vadd.f32 %v100_v10, %v25_v9  ;;  %v307_v12 = vpop.f32.mrb[1].mxu0 }
  0xdd   :  { %v104_v13 = vmul.f32 0.5, %v101_v11 }
  0xdf   :  { %333 = vtanh.f32 %v104_v13 }
  0xe9   :  { %v334_v14 = vpop.eup %333 }
  0xea   :  { %v106_v15 = vmul.f32 0.5, %v334_v14 }
  0xec   :  { %v107_v16 = vadd.f32 0.5, %v106_v15 }
  0xee   :  { %309 = vmatpush3.msk.msra.mxu1 %vm116_vm5, %v107_v16 }
  0xef   :  { %311 = vmatmul.mubr.msk.f32.vlgmr.msra.gmra.mrb[0].mxu1 %vm113_vm6, %v20_v7  ;;  %313 = vmatprep.subr.mxu1 %v342_v4 }
  0xf0   :  { %315 = vmatprep.mubr.msk.f32.mxu1 %vm341_vm3, %v342_v4 }
 0x1c2   :  { %v186_v20 = vpop.f32.mrb[0].mxu1 }
 0x1c3   :  { %v187_v21 = vadd.f32 %v186_v20, %v111_v19  ;;  %v312_v22 = vpop.f32.mrb[1].mxu1 }
 0x1c5   :  { %v190_v23 = vmul.f32 0.5, %v187_v21 }
 0x1c7   :  { %335 = vtanh.f32 %v190_v23 }
 0x1d1   :  { %v336_v24 = vpop.eup %335 }
 0x1d2   :  { %v192_v25 = vmul.f32 0.5, %v336_v24 }
 0x1d4   :  { %v193_v26 = vadd.f32 0.5, %v192_v25 }
 0x1d6   :  { %314 = vmatpush3.msk.msra.mxu1 %vm30_vm0, %v193_v26 }
 0x1d7   :  { %316 = vmatmul.mubr.msk.f32.vlgmr.msra.gmra.mrb[2].mxu1 %vm203_vm7, %v21_v17 }
 0x2aa   :  { %v275_v32 = vpop.f32.mrb[2].mxu1 }
 0x2ab   :  { %v276_v33 = vadd.f32 %v275_v32, %v202_v31  ;;  %v317_v34 = vpop.f32.mrb[3].mxu1 }
 0x2ad   :  { %v279_v35 = vmul.f32 0.5, %v276_v33 }
 0x2af   :  { %337 = vtanh.f32 %v279_v35 }
 0x2b9   :  { %v338_v36 = vpop.eup %337 }
 0x2ba   :  { %v281_v37 = vmul.f32 0.5, %v338_v36 }
 0x2bc   :  { %v282_v38 = vadd.f32 0.5, %v281_v37 }
 0x2be   :  { %283 = vst [vmem:[%s398_s4] sm:$0x1] %v282_v38 }

</bundles_post_ra>
